<compile_context>
chip_gen: v6e
topology: v6e:2x2x1
jax: 0.10.0
libtpu: 0.0.40
codegen_flags: <defaults>
</compile_context>

<pallas_src>
import functools
import math

import jax
import jax.numpy as jnp
import numpy as np
from jax.experimental import pallas as pl
from jax.experimental.pallas import tpu as pltpu


def _sylvester_hadamard(n: int) -> np.ndarray:
    """Sylvester-ordered Hadamard matrix H_n (matches the reference butterfly)."""
    m = int(math.log2(n))
    assert n == 1 << m, "group_size must be a power of 2"
    h = np.array([[1.0]], dtype=np.float64)
    for _ in range(m):
        h = np.block([[h, h], [h, -h]])
    return h


def _hadamard_kernel(x_ref, h_ref, o_ref, *, scale):
    # x_ref: (TM, L) tile of packed rows; h_ref: (L, L) = I_k kron H_G with
    # +/-1 entries.  MXU matmul with f32 accumulation, one scalar VPU multiply
    # for the G**-0.5 normalization, then cast to the output dtype.
    acc = jnp.dot(x_ref[...], h_ref[...], preferred_element_type=jnp.float32)
    o_ref[...] = (acc * scale).astype(o_ref.dtype)


def hadamard_module_forward(x: jax.Array, group_size: int, *,
                            target_tile_bytes: int = 2 * 1024 * 1024) -> jax.Array:
    """Pallas implementation of HadamardModule(group_size).forward(x)."""
    orig_shape = x.shape
    orig_dtype = x.dtype
    d = orig_shape[-1]
    g = group_size
    assert d % g == 0, "last dim must be divisible by group_size"
    assert g == 1 << int(math.log2(g)), "group_size must be a power of 2"

    total = x.size
    num_groups = total // g

    # --- lane packing: L = k*g, k consecutive groups per lane row, L % 128 == 0 ---
    # 256-wide lanes for bf16 (2-vreg rows, matches v6e/v7x MXU tile), 128 for f32.
    lanes_target = 256 if orig_dtype == jnp.bfloat16 else 128
    k_max = max(1, lanes_target // g)

    k = 0
    for cand in range(k_max, 0, -1):
        if (cand * g) % 128 == 0 and num_groups % cand == 0:
            k = cand
            break

    x_flat = x.reshape(-1)
    padded_groups = num_groups
    if k == 0:
        # Ragged group count: pad up to a multiple of k_max so rows stay
        # lane-dense; pad groups are independent under the block-diagonal H.
        k = k_max
        padded_groups = ((num_groups + k - 1) // k) * k
        x_flat = jnp.pad(x_flat, (0, (padded_groups - num_groups) * g))

    lane_w = k * g
    m2 = (padded_groups * g) // lane_w
    x2 = x_flat.reshape(m2, lane_w)

    # Block-diagonal transform: I_k kron H_g, unnormalized (+/-1 exact in bf16/f32).
    # TODO(synk): for very large group_size (H_G no longer VMEM-friendly) a
    # Kronecker factorization H_G = H_A kron H_B with two smaller matmuls would
    # be needed; quantization group sizes are small so it is not implemented.
    h_block = np.kron(np.eye(k), _sylvester_hadamard(g))
    h = jnp.asarray(h_block, dtype=orig_dtype)

    # Row tile: ~2 MiB per input block (roofline plateau), multiple of 8 rows.
    bytes_per_row = lane_w * np.dtype(orig_dtype).itemsize
    tm = max(8, (target_tile_bytes // bytes_per_row) // 8 * 8)
    tm_eff = m2 if m2 <= tm else tm     # full dim for small inputs, else 8-aligned
    grid = (pl.cdiv(m2, tm_eff),)

    kernel = functools.partial(_hadamard_kernel, scale=float(g) ** -0.5)

    out = pl.pallas_call(
        kernel,
        out_shape=jax.ShapeDtypeStruct((m2, lane_w), orig_dtype),
        grid_spec=pltpu.PrefetchScalarGridSpec(
            num_scalar_prefetch=0,
            grid=grid,
            in_specs=[
                pl.BlockSpec((tm_eff, lane_w), lambda i: (i, 0)),
                # Constant block index -> H is DMA'd once and kept resident.
                pl.BlockSpec((lane_w, lane_w), lambda i: (0, 0)),
            ],
            out_specs=pl.BlockSpec((tm_eff, lane_w), lambda i: (i, 0)),
        ),
        compiler_params=pltpu.CompilerParams(
            dimension_semantics=("parallel",),
        ),
    )(x2, h)

    out_flat = out.reshape(-1)
    if padded_groups != num_groups:
        out_flat = out_flat[:total]
    return out_flat.reshape(orig_shape)


def _reference_fwht(x: jnp.ndarray, group_size: int) -> jnp.ndarray:
    """Pure-JAX port of the PyTorch butterfly, for correctness checks."""
    orig_shape = x.shape
    x = x.reshape(-1, x.shape[-1] // group_size, group_size)
    n = x.shape[-1]
    m = int(math.log2(n))
    x = x[..., None]
    inv_sqrt2 = 0.5 ** 0.5
    for _ in range(m):
        top = x[..., ::2, :] + x[..., 1::2, :]
        bot = x[..., ::2, :] - x[..., 1::2, :]
        x = jnp.concatenate((top, bot), axis=-1) * inv_sqrt2
    x = jnp.squeeze(x, axis=-2)
    return x.reshape(orig_shape)


if __name__ == "__main__":
    key = jax.random.PRNGKey(0)
    k1, k2, k3 = jax.random.split(key, 3)

    # --- f32 path: (batch=2, seq=4, hidden=64), group_size=16 ---
    group_size = 16
    x_f32 = jax.random.normal(k1, (2, 4, 64), dtype=jnp.float32)
    y = jax.block_until_ready(hadamard_module_forward(x_f32, group_size))
    y_ref = _reference_fwht(x_f32, group_size)
    np.testing.assert_allclose(np.asarray(y), np.asarray(y_ref), rtol=1e-5, atol=1e-5)

    # --- bf16 path: (batch=2, seq=8, hidden=128), group_size=32 ---
    group_size_b = 32
    x_bf16 = jax.random.normal(k2, (2, 8, 128), dtype=jnp.float32).astype(jnp.bfloat16)
    yb = jax.block_until_ready(hadamard_module_forward(x_bf16, group_size_b))
    yb_ref = _reference_fwht(x_bf16.astype(jnp.float32), group_size_b)
    np.testing.assert_allclose(
        np.asarray(yb, dtype=np.float32), np.asarray(yb_ref), rtol=5e-2, atol=5e-2
    )

    # --- ragged group count (exercises the lane-dense pad fallback) ---
    group_size_r = 16
    x_rag = jax.random.normal(k3, (3, 48), dtype=jnp.float32)   # 9 groups total
    yr = jax.block_until_ready(hadamard_module_forward(x_rag, group_size_r))
    yr_ref = _reference_fwht(x_rag, group_size_r)
    np.testing.assert_allclose(np.asarray(yr), np.asarray(yr_ref), rtol=1e-5, atol=1e-5)

    print("KERNEL_OK")
</pallas_src>

<mosaic_0001>
module attributes {stable_mosaic.version = 11 : i64} {
  func.func @_hadamard_kernel(%arg0: i32, %arg1: memref<4x128xf32, #tpu.memory_space<vmem>>, %arg2: memref<128x128xf32, #tpu.memory_space<vmem>>, %arg3: memref<4x128xf32, #tpu.memory_space<vmem>>) attributes {dimension_semantics = [#tpu.dimension_semantics<parallel>], iteration_bounds = array<i64: 1>, scalar_prefetch = 0 : i64, scratch_operands = 0 : i64, tpu.core_type = #tpu.core_type<tc>, window_params = [{transform_indices = @transform_0, window_bounds = array<i64: 4, 128>}, {pipeline_mode = #tpu.pipeline_mode<synchronous>, transform_indices = @transform_1, window_bounds = array<i64: 128, 128>}, {transform_indices = @transform_2, window_bounds = array<i64: 4, 128>}]} {
    %c0 = arith.constant 0 : index
    %c0_0 = arith.constant 0 : index
    %0 = vector.load %arg1[%c0, %c0_0] : memref<4x128xf32, #tpu.memory_space<vmem>>, vector<4x128xf32>
    %c0_1 = arith.constant 0 : index
    %c0_2 = arith.constant 0 : index
    %1 = vector.load %arg2[%c0_1, %c0_2] : memref<128x128xf32, #tpu.memory_space<vmem>>, vector<128x128xf32>
    %cst = arith.constant dense<0.000000e+00> : vector<4x128xf32>
    %2 = tpu.matmul %0, %1, %cst {dimension_numbers = #tpu.dot_dimension_numbers<[1], [0], [0], [1], [0, 0, 1, 1], [], []>} : vector<4x128xf32>, vector<128x128xf32>, vector<4x128xf32> -> vector<4x128xf32>
    %cst_3 = arith.constant 2.500000e-01 : f32
    %3 = vector.broadcast %cst_3 : f32 to vector<4x128xf32>
    %4 = arith.mulf %2, %3 : vector<4x128xf32>
    %c0_4 = arith.constant 0 : index
    %c0_5 = arith.constant 0 : index
    %5 = vector.load %arg3[%c0_4, %c0_5] : memref<4x128xf32, #tpu.memory_space<vmem>>, vector<4x128xf32>
    tpu.vector_store %arg3[%c0_4, %c0_5], %4 {strides = array<i32>} : memref<4x128xf32, #tpu.memory_space<vmem>>, vector<4x128xf32>,
    return
  }
  func.func @transform_0(%arg0: i32) -> (i32, i32) {
    %c0_i32 = arith.constant 0 : i32
    %c0_i32_0 = arith.constant 0 : i32
    return %arg0, %c0_i32 : i32, i32
  }
  func.func @transform_1(%arg0: i32) -> (i32, i32) {
    %c0_i32 = arith.constant 0 : i32
    %c0_i32_0 = arith.constant 0 : i32
    %c0_i32_1 = arith.constant 0 : i32
    return %c0_i32, %c0_i32_0 : i32, i32
  }
  func.func @transform_2(%arg0: i32) -> (i32, i32) {
    %c0_i32 = arith.constant 0 : i32
    %c0_i32_0 = arith.constant 0 : i32
    return %arg0, %c0_i32 : i32, i32
  }
}

</mosaic_0001>

<bundles_post_ra>
// kernel: tpu_custom_call.1
= control target key start
LH: loop header
LB: loop body
LE: loop exit
PB: predicated region body
PF: predicated region fallthrough
CT: control target
= control target key end

     0   :  { %7 = vsyncpa [#allocation3], 0  ;;  %s299_s0 = inlined_call_operand.hbm [shape: f32[4,128], index: 0, kind: input, shape index: {}]   ;;  %s300_s1 = inlined_call_operand.hbm [shape: f32[128,128], index: 1, kind: input, shape index: {}]   ;;  %s301_s2 = inlined_call_operand.hbm [shape: f32[4,128], index: 2, kind: output, shape index: {}]  }
   0x1   :  { %8 = vsyncpa [#allocation6], 0 }
   0x2   :  { %9 = vsyncpa [#allocation4], 0  ;;  %s268_s9 = smov [#allocation2]   ;;  %s269_s11 = smov [#allocation5]  }
   0x3   :  { %s16_s10 = sshll.u32 %s268_s9, 4  ;;  %s25_s12 = sshll.u32 %s269_s11, 4  ;;  %s17_s10 = int_to_ptr.vmem [resolvable:$true] %s16_s10  ;;  %s26_s12 = int_to_ptr.vmem [resolvable:$true] %s25_s12 }
   0x4   :  { %s210_s13 = scalar_lea.vmem %s17_s10, 64  ;;  %p215_p1 = scmp.lt.s32.totalorder %s17_s10, %s17_s10 }
   0x5   :  { %p211_p0 = scmp.ne.s32.totalorder %s17_s10, %s210_s13  ;;  %p216_p2 = scmp.lt.s32.totalorder %s210_s13, %s210_s13 }
   0x7   :  { %p217_p3 = por %p216_p2, %p215_p1 }
   0x9   :  { %p218_p4 = pnand %p217_p3, %p211_p0 }
   0xb   :  { %221 = shalt.err (!%p218_p4)
}
   0xc   :  { %19 = dma.hbm_to_vmem [thread:$0]  %s299_s0, 64, %s17_s10, [#allocation3]  }
   0xd   :  { %s230_s16 = scalar_lea.vmem %s26_s12, 2048  ;;  %p235_p6 = scmp.lt.s32.totalorder %s26_s12, %s26_s12 }
   0xe   :  { %p231_p5 = scmp.ne.s32.totalorder %s26_s12, %s230_s16  ;;  %p236_p7 = scmp.lt.s32.totalorder %s230_s16, %s230_s16 }
  0x10   :  { %p237_p8 = por %p236_p7, %p235_p6 }
  0x12   :  { %p238_p9 = pnand %p237_p8, %p231_p5 }
  0x14   :  { %241 = shalt.err (!%p238_p9)
}
  0x15   :  { %s270_s17 = smov 128   ;;  %s271_s18 = smov 8  }
  0x16   :  { %31 = dma.hbm_to_vmem [thread:$0]  %s300_s1, 2048, %s26_s12, [#allocation6], %s270_s17, %s270_s17, %s271_s18  }
  0x17   :  { %262 = dma.done.wait [#allocation3], 64  }
  0x18   :  { %263 = vsyncadd [#allocation3], 4294967232 }
  0x19   :  { %264 = dma.done.wait [#allocation6], 2048  }
  0x1a   :  { %265 = vsyncadd [#allocation6], 4294965248  ;;  %v272_v0 = vmov 0.0   ;;  %vm273_vm0 = vmmov 0   ;;  %v54_v1 = vld [vmem:[#allocation5 + $0x78] sm:$0xff]  ;;  %v53_v2 = vld [vmem:[#allocation5 + $0x70] sm:$0xff] }
  0x1b   :  { %160 = vmatprep.subr.mxu0 %v272_v0  ;;  %192 = vmatprep.mubr.msk.f32.mxu0 %vm273_vm0, %v272_v0  ;;  %v52_v3 = vld [vmem:[#allocation5 + $0x68] sm:$0xff]  ;;  %v51_v4 = vld [vmem:[#allocation5 + $0x60] sm:$0xff]  ;;  %v50_v5 = vld [vmem:[#allocation5 + $0x58] sm:$0xff]  ;;  %s274_s0 = smov [#allocation7]  }
  0x1c   :  { %161 = vmatpush3.msra.mxu0 %v54_v1  ;;  %v49_v6 = vld [vmem:[#allocation5 + $0x50] sm:$0xff]  ;;  %v48_v7 = vld [vmem:[#allocation5 + $0x48] sm:$0xff]  ;;  %v47_v8 = vld [vmem:[#allocation5 + $0x40] sm:$0xff]  ;;  %s133_s1 = sshll.u32 %s274_s0, 4  ;;  %s134_s1 = int_to_ptr.vmem [resolvable:$true] %s133_s1 }
  0x1d   :  { %162 = vmatprep.subr.mxu0 %v272_v0  ;;  %v46_v9 = vld [vmem:[#allocation5 + $0x38] sm:$0xff]  ;;  %v45_v10 = vld [vmem:[#allocation5 + $0x30] sm:$0xff]  ;;  %v44_v11 = vld [vmem:[#allocation5 + $0x28] sm:$0xff]  ;;  %s242_s21 = scalar_lea.vmem %s134_s1, 64  ;;  %p247_p11 = scmp.lt.s32.totalorder %s134_s1, %s134_s1 }
  0x1e   :  { %163 = vmatpush3.msra.mxu0 %v53_v2  ;;  %v43_v12 = vld [vmem:[#allocation5 + $0x20] sm:$0xff]  ;;  %v42_v13 = vld [vmem:[#allocation5 + $0x18] sm:$0xff]  ;;  %v41_v14 = vld [vmem:[#allocation5 + $0x10] sm:$0xff]  ;;  %p243_p10 = scmp.ne.s32.totalorder %s134_s1, %s242_s21  ;;  %p248_p12 = scmp.lt.s32.totalorder %s242_s21, %s242_s21 }
  0x1f   :  { %164 = vmatprep.subr.mxu0 %v272_v0  ;;  %v40_v15 = vld [vmem:[#allocation5 + $0x8] sm:$0xff]  ;;  %v39_v16 = vld [vmem:[#allocation5] sm:$0xff]  ;;  %v38_v17 = vld [vmem:[#allocation2] sm:$0xf] }
  0x20   :  { %165 = vmatpush3.msra.mxu0 %v52_v3  ;;  %p249_p13 = por %p248_p12, %p247_p11 }
  0x21   :  { %166 = vmatprep.subr.mxu0 %v272_v0 }
  0x22   :  { %167 = vmatpush3.msra.mxu0 %v51_v4  ;;  %p250_p0 = pnand %p249_p13, %p243_p10 }
  0x23   :  { %168 = vmatprep.subr.mxu0 %v272_v0 }
  0x24   :  { %169 = vmatpush3.msra.mxu0 %v50_v5 }
  0x25   :  { %170 = vmatprep.subr.mxu0 %v272_v0 }
  0x26   :  { %171 = vmatpush3.msra.mxu0 %v49_v6 }
  0x27   :  { %172 = vmatprep.subr.mxu0 %v272_v0 }
  0x28   :  { %173 = vmatpush3.msra.mxu0 %v48_v7 }
  0x29   :  { %174 = vmatprep.subr.mxu0 %v272_v0 }
  0x2a   :  { %175 = vmatpush3.msra.mxu0 %v47_v8 }
  0x2b   :  { %176 = vmatprep.subr.mxu0 %v272_v0 }
  0x2c   :  { %177 = vmatpush3.msra.mxu0 %v46_v9 }
  0x2d   :  { %178 = vmatprep.subr.mxu0 %v272_v0 }
  0x2e   :  { %179 = vmatpush3.msra.mxu0 %v45_v10 }
  0x2f   :  { %180 = vmatprep.subr.mxu0 %v272_v0 }
  0x30   :  { %181 = vmatpush3.msra.mxu0 %v44_v11 }
  0x31   :  { %182 = vmatprep.subr.mxu0 %v272_v0 }
  0x32   :  { %183 = vmatpush3.msra.mxu0 %v43_v12 }
  0x33   :  { %184 = vmatprep.subr.mxu0 %v272_v0 }
  0x34   :  { %185 = vmatpush3.msra.mxu0 %v42_v13 }
  0x35   :  { %186 = vmatprep.subr.mxu0 %v272_v0 }
  0x36   :  { %187 = vmatpush3.msra.mxu0 %v41_v14 }
  0x37   :  { %188 = vmatprep.subr.mxu0 %v272_v0 }
  0x38   :  { %189 = vmatpush3.msra.mxu0 %v40_v15 }
  0x39   :  { %190 = vmatprep.subr.mxu0 %v272_v0 }
  0x3a   :  { %191 = vmatpush3.msra.mxu0 %v39_v16 }
  0x3b   :  { %193 = vmatmul.mubr.f32.vlgmr.msra.gmra.mxu0 %v38_v17 }
  0xfb   :  { %v121_v18 = vpop.f32.mrf.mxu0 }
  0xfc   :  { %v125_v19 = vmul.f32 0.25, %v121_v18 }
  0xfd   :  { %v194_v20 = vpop.f32.mrf.mxu0 }
  0xfe   :  { %126 = vst [vmem:[#allocation7] sm:$0xf] %v125_v19 }
  0xff   :  { %253 = shalt.err (!%p250_p0)
}
 0x100   :  { %136 = dma.vmem_to_hbm [thread:$0]  %s134_s1, 64, %s301_s2, [#allocation4]  }
 0x101   :  { %266 = dma.done.wait [#allocation4], 64  }
 0x102   :  { %267 = vsyncadd [#allocation4], 4294967232 }
 0x103   :  { %140 = vsyncpa [#allocation3], 1 }
 0x104   :  { %141 = vsyncpa [#allocation6], 1 }
 0x105   :  { %142 = vsyncpa [#allocation4], 1 }

</bundles_post_ra>
